<compile_context>
chip_gen: v7x
topology: tpu7x:2x2x1
jax: 0.10.0
libtpu: 0.0.40
codegen_flags: <defaults>
</compile_context>

<pallas_src>
import math
import numpy as np
import jax
import jax.numpy as jnp
from jax.experimental import pallas as pl
from jax.experimental.pallas import tpu as pltpu


def _gaussian_1d(window_size: int, sigma: float) -> np.ndarray:
    x = np.arange(window_size, dtype=np.float64)
    g = np.exp(-((x - window_size // 2) ** 2) / (2.0 * sigma ** 2))
    return g / g.sum()


def _band_matrix(size: int, window_size: int, sigma: float, vertical: bool) -> np.ndarray:
    """Banded matrix implementing a zero-padded 1D Gaussian conv along one axis.

    horizontal (vertical=False):  out[i, c] = sum_r x[i, r] * B[r, c]
    vertical   (vertical=True):   out[i, w] = sum_r B[i, r] * x[r, w]
    Combined (outer-product window) they reproduce
    F.conv2d(x, outer(g, g), padding=window_size // 2) exactly.
    """
    g = _gaussian_1d(window_size, sigma)
    pad = window_size // 2
    b = np.zeros((size, size), dtype=np.float64)
    for r in range(size):
        for c in range(size):
            k = r - c + pad
            if 0 <= k < window_size:
                b[r, c] = g[k]
    return b.T if vertical else b


def _vmem_capacity_bytes() -> int:
    try:
        cap = int(pltpu.get_tpu_info().vmem_capacity_bytes)
        return min(max(cap, 16 * 1024 * 1024), 128 * 1024 * 1024)
    except Exception:
        return 64 * 1024 * 1024      # conservative default (v7x per-core size)


def _choose_pb(P: int, H: int, W: int, itemsize: int, budget: int) -> int:
    """Planes folded into the lane dim per grid step (PB); PB*W % 128 == 0."""
    align = 1 if W % 128 == 0 else 128 // math.gcd(W, 128)

    def r_up(v, m):
        return -(-v // m) * m

    def vmem_est(pb):
        pbw = pb * W
        return (4 * H * pbw * itemsize      # 2 inputs, double-buffered, native dtype
                + 22 * H * pbw * 4          # f32 casts + 5-map scratch + conv + temps
                + 2 * pbw * pbw * 4         # block-diagonal Gh (+ pipeline copy)
                + 2 * H * H * 4             # Gv (+ pipeline copy)
                + 2 * 8 * pbw * 4)          # output block

    # ~256 folded lanes per map fills a v6e/v7x MXU tile; never go below 128.
    pb = min(r_up(max(1, -(-256 // W)), align), r_up(max(P, 1), align))
    pb = max(pb, align)
    while pb > align and vmem_est(pb) > budget:
        pb -= align
    # TODO(synk): if even pb == align overflows VMEM (huge H*W), add H-halo tiling
    # (window_size//2-row halo per band) instead of relying on spills.

    # Prefer >= 2 parallel grid steps (both v7x TensorCores) when lanes stay >= 128.
    if -(-P // pb) == 1 and pb > align:
        pb_half = r_up(-(-P // 2), align)
        if pb_half < pb:
            pb = pb_half
    return pb


def _make_ssim_kernel(H: int, PBW: int):
    C1 = 0.01 ** 2
    C2 = 0.03 ** 2

    def kernel(i1_ref, i2_ref, ghbd_ref, gv_ref, out_ref, maps_ref):
        p1 = i1_ref[...].astype(jnp.float32)          # (H, PBW)
        p2 = i2_ref[...].astype(jnp.float32)
        ghbd = ghbd_ref[...]                          # (PBW, PBW) block-diag horizontal band
        gv = gv_ref[...]                              # (H, H)     vertical band

        # Horizontal Gaussian pass, written straight into the stacked-maps scratch
        # (lane offsets are multiples of PBW, itself a multiple of 128 -> unmasked vst).
        maps_ref[:, 0 * PBW:1 * PBW] = jnp.dot(p1, ghbd, preferred_element_type=jnp.float32)
        maps_ref[:, 1 * PBW:2 * PBW] = jnp.dot(p2, ghbd, preferred_element_type=jnp.float32)
        maps_ref[:, 2 * PBW:3 * PBW] = jnp.dot(p1 * p1, ghbd, preferred_element_type=jnp.float32)
        maps_ref[:, 3 * PBW:4 * PBW] = jnp.dot(p2 * p2, ghbd, preferred_element_type=jnp.float32)
        maps_ref[:, 4 * PBW:5 * PBW] = jnp.dot(p1 * p2, ghbd, preferred_element_type=jnp.float32)

        # Vertical Gaussian pass: ONE lane-dense MXU matmul (N = 5*PBW), no Gv broadcast.
        conv = jnp.dot(gv, maps_ref[...], preferred_element_type=jnp.float32)   # (H, 5*PBW)

        mu1 = conv[:, 0 * PBW:1 * PBW]
        mu2 = conv[:, 1 * PBW:2 * PBW]
        s11 = conv[:, 2 * PBW:3 * PBW]
        s22 = conv[:, 3 * PBW:4 * PBW]
        s12 = conv[:, 4 * PBW:5 * PBW]

        mu1_sq = mu1 * mu1
        mu2_sq = mu2 * mu2
        mu1_mu2 = mu1 * mu2
        sigma1_sq = s11 - mu1_sq
        sigma2_sq = s22 - mu2_sq
        sigma12 = s12 - mu1_mu2

        num = (2.0 * mu1_mu2 + C1) * (2.0 * sigma12 + C2)
        den = (mu1_sq + mu2_sq + C1) * (sigma1_sq + sigma2_sq + C2)
        ssim_map = num * pl.reciprocal(den, approx=True)        # divide -> EUP slot

        # Per-lane-column partial sums, emitted lane-dense; the per-plane grouping
        # and the final mean happen in the (tiny) wrapper reduction.
        col = jnp.sum(ssim_map, axis=0, keepdims=True)          # (1, PBW)
        out_ref[...] = jnp.broadcast_to(col, (8, PBW))

    return kernel


def ssim_pallas(img1, img2, window_size: int = 11, sigma: float = 1.5,
                size_average: bool = True):
    """SSIM with Gaussian window, matching pytorch_ssim.SSIM forward semantics."""
    assert img1.shape == img2.shape
    N, C, H, W = img1.shape
    P = N * C
    itemsize = jnp.dtype(img1.dtype).itemsize

    vmem_cap = _vmem_capacity_bytes()
    budget = int(0.60 * vmem_cap)
    vmem_limit = min(int(0.85 * vmem_cap), 110 * 1024 * 1024)

    PB = _choose_pb(P, H, W, itemsize, budget)
    PBW = PB * W
    n_steps = -(-P // PB)
    P_pad = n_steps * PB

    x1 = img1.reshape(P, H, W)
    x2 = img2.reshape(P, H, W)
    if P_pad != P:
        z = jnp.zeros((P_pad - P, H, W), img1.dtype)
        x1 = jnp.concatenate([x1, z], axis=0)
        x2 = jnp.concatenate([x2, z], axis=0)

    # Lane-fold relayout (one XLA transpose in HBM): (P_pad, H, W) -> (H, P_pad*W)
    # with plane p occupying lanes [p*W, (p+1)*W).
    # TODO(synk): skip this transpose when PB == 1 (plane-major blocks suffice).
    x1 = jnp.transpose(x1, (1, 0, 2)).reshape(H, P_pad * W)
    x2 = jnp.transpose(x2, (1, 0, 2)).reshape(H, P_pad * W)

    gh = _band_matrix(W, window_size, sigma, vertical=False)
    gv = _band_matrix(H, window_size, sigma, vertical=True)
    # Block-diagonal horizontal band: zero off-diagonal blocks keep the per-plane
    # zero-padded conv exact (no cross-plane leakage).
    # TODO(synk): for very large W, tile the K axis over the +/-1 band tiles (or use
    # 11 pltpu.roll FMA passes) instead of a dense (PBW, PBW) matmul.
    ghbd = jnp.asarray(np.kron(np.eye(PB), gh), dtype=jnp.float32)
    gv = jnp.asarray(gv, dtype=jnp.float32)

    kernel = _make_ssim_kernel(H, PBW)

    res = pl.pallas_call(
        kernel,
        out_shape=jax.ShapeDtypeStruct((8 * n_steps, PBW), jnp.float32),
        grid_spec=pltpu.PrefetchScalarGridSpec(
            num_scalar_prefetch=0,
            grid=(n_steps,),
            in_specs=[
                pl.BlockSpec((H, PBW), lambda i: (0, i)),
                pl.BlockSpec((H, PBW), lambda i: (0, i)),
                pl.BlockSpec((PBW, PBW), lambda i: (0, 0)),
                pl.BlockSpec((H, H), lambda i: (0, 0)),
            ],
            out_specs=pl.BlockSpec((8, PBW), lambda i: (i, 0)),
            scratch_shapes=[pltpu.VMEM((H, 5 * PBW), jnp.float32)],
        ),
        compiler_params=pltpu.CompilerParams(
            dimension_semantics=("parallel",),
            vmem_limit_bytes=vmem_limit),
    )(x1, x2, ghbd, gv)

    # Finish the reduction on the tiny (n_steps, PBW) partial-sum slab.
    col = res.reshape(n_steps, 8, PB, W)[:, 0]             # per-column sums (row 0 of each block)
    plane_sums = jnp.sum(col, axis=-1).reshape(P_pad)[:P]  # per-(n, c) sums of ssim_map
    if size_average:
        return jnp.sum(plane_sums) / float(P * H * W)
    else:
        # PyTorch: ssim_map.mean(1).mean(1).mean(1) -> per-image mean over (C, H, W).
        return jnp.sum(plane_sums.reshape(N, C), axis=1) / float(C * H * W)


def _ssim_reference_numpy(img1, img2, window_size=11, sigma=1.5):
    """Host-side NumPy reference reproducing _ssim; returns the full ssim_map."""
    img1 = np.asarray(img1, dtype=np.float64)
    img2 = np.asarray(img2, dtype=np.float64)
    N, C, H, W = img1.shape
    pad = window_size // 2
    g = _gaussian_1d(window_size, sigma)
    win = np.outer(g, g)

    def conv(x):
        xp = np.pad(x, ((0, 0), (0, 0), (pad, pad), (pad, pad)))
        out = np.zeros_like(x)
        for i in range(window_size):
            for j in range(window_size):
                out += win[i, j] * xp[:, :, i:i + H, j:j + W]
        return out

    mu1, mu2 = conv(img1), conv(img2)
    mu1_sq, mu2_sq, mu1_mu2 = mu1 ** 2, mu2 ** 2, mu1 * mu2
    s1 = conv(img1 * img1) - mu1_sq
    s2 = conv(img2 * img2) - mu2_sq
    s12 = conv(img1 * img2) - mu1_mu2
    C1, C2 = 0.01 ** 2, 0.03 ** 2
    return (2 * mu1_mu2 + C1) * (2 * s12 + C2) / \
           ((mu1_sq + mu2_sq + C1) * (s1 + s2 + C2))


if __name__ == "__main__":
    key = jax.random.PRNGKey(0)
    k1, k2 = jax.random.split(key)
    N, C, H, W = 2, 3, 16, 16
    base = jax.random.uniform(k1, (N, C, H, W), dtype=jnp.float32)
    noise = jax.random.uniform(k2, (N, C, H, W), dtype=jnp.float32)
    img1 = base
    img2 = jnp.clip(0.8 * base + 0.2 * noise, 0.0, 1.0)

    out = ssim_pallas(img1, img2, window_size=11, sigma=1.5, size_average=True)
    out = jax.block_until_ready(out)

    ref_map = _ssim_reference_numpy(np.asarray(img1), np.asarray(img2))
    ref = float(ref_map.mean())
    assert abs(float(out) - ref) < 2e-3, (float(out), ref)

    out_per_img = ssim_pallas(img1, img2, size_average=False)
    out_per_img = np.asarray(jax.block_until_ready(out_per_img))
    ref_per_img = ref_map.mean(axis=(1, 2, 3))
    assert np.max(np.abs(out_per_img - ref_per_img)) < 2e-3, (out_per_img, ref_per_img)

    print("KERNEL_OK")
</pallas_src>

<mosaic_0001>
module attributes {stable_mosaic.version = 11 : i64} {
  func.func @kernel(%arg0: i32, %arg1: memref<16x128xf32, #tpu.memory_space<vmem>>, %arg2: memref<16x128xf32, #tpu.memory_space<vmem>>, %arg3: memref<128x128xf32, #tpu.memory_space<vmem>>, %arg4: memref<16x16xf32, #tpu.memory_space<vmem>>, %arg5: memref<8x128xf32, #tpu.memory_space<vmem>>, %arg6: memref<16x640xf32, #tpu.memory_space<vmem>>) attributes {dimension_semantics = [#tpu.dimension_semantics<parallel>], iteration_bounds = array<i64: 1>, scalar_prefetch = 0 : i64, scratch_operands = 1 : i64, tpu.core_type = #tpu.core_type<tc>, window_params = [{transform_indices = @transform_0, window_bounds = array<i64: 16, 128>}, {transform_indices = @transform_1, window_bounds = array<i64: 16, 128>}, {pipeline_mode = #tpu.pipeline_mode<synchronous>, transform_indices = @transform_2, window_bounds = array<i64: 128, 128>}, {pipeline_mode = #tpu.pipeline_mode<synchronous>, transform_indices = @transform_3, window_bounds = array<i64: 16, 16>}, {transform_indices = @transform_4, window_bounds = array<i64: 8, 128>}]} {
    %c0 = arith.constant 0 : index
    %c0_0 = arith.constant 0 : index
    %0 = vector.load %arg1[%c0, %c0_0] : memref<16x128xf32, #tpu.memory_space<vmem>>, vector<16x128xf32>
    %c0_1 = arith.constant 0 : index
    %c0_2 = arith.constant 0 : index
    %1 = vector.load %arg2[%c0_1, %c0_2] : memref<16x128xf32, #tpu.memory_space<vmem>>, vector<16x128xf32>
    %c0_3 = arith.constant 0 : index
    %c0_4 = arith.constant 0 : index
    %2 = vector.load %arg3[%c0_3, %c0_4] : memref<128x128xf32, #tpu.memory_space<vmem>>, vector<128x128xf32>
    %c0_5 = arith.constant 0 : index
    %c0_6 = arith.constant 0 : index
    %3 = vector.load %arg4[%c0_5, %c0_6] : memref<16x16xf32, #tpu.memory_space<vmem>>, vector<16x16xf32>
    %cst = arith.constant dense<0.000000e+00> : vector<16x128xf32>
    %4 = tpu.matmul %0, %2, %cst {dimension_numbers = #tpu.dot_dimension_numbers<[1], [0], [0], [1], [0, 0, 1, 1], [], []>} : vector<16x128xf32>, vector<128x128xf32>, vector<16x128xf32> -> vector<16x128xf32>
    %c0_7 = arith.constant 0 : index
    %c0_8 = arith.constant 0 : index
    %5 = vector.load %arg6[%c0_7, %c0_8] : memref<16x640xf32, #tpu.memory_space<vmem>>, vector<16x128xf32>
    tpu.vector_store %arg6[%c0_7, %c0_8], %4 {strides = array<i32>} : memref<16x640xf32, #tpu.memory_space<vmem>>, vector<16x128xf32>,
    %cst_9 = arith.constant dense<0.000000e+00> : vector<16x128xf32>
    %6 = tpu.matmul %1, %2, %cst_9 {dimension_numbers = #tpu.dot_dimension_numbers<[1], [0], [0], [1], [0, 0, 1, 1], [], []>} : vector<16x128xf32>, vector<128x128xf32>, vector<16x128xf32> -> vector<16x128xf32>
    %c0_10 = arith.constant 0 : index
    %c128 = arith.constant 128 : index
    %7 = vector.load %arg6[%c0_10, %c128] : memref<16x640xf32, #tpu.memory_space<vmem>>, vector<16x128xf32>
    tpu.vector_store %arg6[%c0_10, %c128], %6 {strides = array<i32>} : memref<16x640xf32, #tpu.memory_space<vmem>>, vector<16x128xf32>,
    %8 = arith.mulf %0, %0 : vector<16x128xf32>
    %cst_11 = arith.constant dense<0.000000e+00> : vector<16x128xf32>
    %9 = tpu.matmul %8, %2, %cst_11 {dimension_numbers = #tpu.dot_dimension_numbers<[1], [0], [0], [1], [0, 0, 1, 1], [], []>} : vector<16x128xf32>, vector<128x128xf32>, vector<16x128xf32> -> vector<16x128xf32>
    %c0_12 = arith.constant 0 : index
    %c256 = arith.constant 256 : index
    %10 = vector.load %arg6[%c0_12, %c256] : memref<16x640xf32, #tpu.memory_space<vmem>>, vector<16x128xf32>
    tpu.vector_store %arg6[%c0_12, %c256], %9 {strides = array<i32>} : memref<16x640xf32, #tpu.memory_space<vmem>>, vector<16x128xf32>,
    %11 = arith.mulf %1, %1 : vector<16x128xf32>
    %cst_13 = arith.constant dense<0.000000e+00> : vector<16x128xf32>
    %12 = tpu.matmul %11, %2, %cst_13 {dimension_numbers = #tpu.dot_dimension_numbers<[1], [0], [0], [1], [0, 0, 1, 1], [], []>} : vector<16x128xf32>, vector<128x128xf32>, vector<16x128xf32> -> vector<16x128xf32>
    %c0_14 = arith.constant 0 : index
    %c384 = arith.constant 384 : index
    %13 = vector.load %arg6[%c0_14, %c384] : memref<16x640xf32, #tpu.memory_space<vmem>>, vector<16x128xf32>
    tpu.vector_store %arg6[%c0_14, %c384], %12 {strides = array<i32>} : memref<16x640xf32, #tpu.memory_space<vmem>>, vector<16x128xf32>,
    %14 = arith.mulf %0, %1 : vector<16x128xf32>
    %cst_15 = arith.constant dense<0.000000e+00> : vector<16x128xf32>
    %15 = tpu.matmul %14, %2, %cst_15 {dimension_numbers = #tpu.dot_dimension_numbers<[1], [0], [0], [1], [0, 0, 1, 1], [], []>} : vector<16x128xf32>, vector<128x128xf32>, vector<16x128xf32> -> vector<16x128xf32>
    %c0_16 = arith.constant 0 : index
    %c512 = arith.constant 512 : index
    %16 = vector.load %arg6[%c0_16, %c512] : memref<16x640xf32, #tpu.memory_space<vmem>>, vector<16x128xf32>
    tpu.vector_store %arg6[%c0_16, %c512], %15 {strides = array<i32>} : memref<16x640xf32, #tpu.memory_space<vmem>>, vector<16x128xf32>,
    %c0_17 = arith.constant 0 : index
    %c0_18 = arith.constant 0 : index
    %17 = vector.load %arg6[%c0_17, %c0_18] : memref<16x640xf32, #tpu.memory_space<vmem>>, vector<16x640xf32>
    %cst_19 = arith.constant dense<0.000000e+00> : vector<16x640xf32>
    %18 = tpu.matmul %3, %17, %cst_19 {dimension_numbers = #tpu.dot_dimension_numbers<[1], [0], [0], [1], [0, 0, 1, 1], [], []>} : vector<16x16xf32>, vector<16x640xf32>, vector<16x640xf32> -> vector<16x640xf32>
    %19 = vector.extract_strided_slice %18 {offsets = [0, 0], sizes = [16, 128], strides = [1, 1]} : vector<16x640xf32> to vector<16x128xf32>
    %20 = vector.extract_strided_slice %18 {offsets = [0, 128], sizes = [16, 128], strides = [1, 1]} : vector<16x640xf32> to vector<16x128xf32>
    %21 = vector.extract_strided_slice %18 {offsets = [0, 256], sizes = [16, 128], strides = [1, 1]} : vector<16x640xf32> to vector<16x128xf32>
    %22 = vector.extract_strided_slice %18 {offsets = [0, 384], sizes = [16, 128], strides = [1, 1]} : vector<16x640xf32> to vector<16x128xf32>
    %23 = vector.extract_strided_slice %18 {offsets = [0, 512], sizes = [16, 128], strides = [1, 1]} : vector<16x640xf32> to vector<16x128xf32>
    %24 = arith.mulf %19, %19 : vector<16x128xf32>
    %25 = arith.mulf %20, %20 : vector<16x128xf32>
    %26 = arith.mulf %19, %20 : vector<16x128xf32>
    %27 = arith.subf %21, %24 : vector<16x128xf32>
    %28 = arith.subf %22, %25 : vector<16x128xf32>
    %29 = arith.subf %23, %26 : vector<16x128xf32>
    %cst_20 = arith.constant 2.000000e+00 : f32
    %30 = vector.broadcast %cst_20 : f32 to vector<16x128xf32>
    %31 = arith.mulf %30, %26 : vector<16x128xf32>
    %cst_21 = arith.constant 9.99999974E-5 : f32
    %32 = vector.broadcast %cst_21 : f32 to vector<16x128xf32>
    %33 = arith.addf %31, %32 : vector<16x128xf32>
    %cst_22 = arith.constant 2.000000e+00 : f32
    %34 = vector.broadcast %cst_22 : f32 to vector<16x128xf32>
    %35 = arith.mulf %34, %29 : vector<16x128xf32>
    %cst_23 = arith.constant 8.99999984E-4 : f32
    %36 = vector.broadcast %cst_23 : f32 to vector<16x128xf32>
    %37 = arith.addf %35, %36 : vector<16x128xf32>
    %38 = arith.mulf %33, %37 : vector<16x128xf32>
    %39 = arith.addf %24, %25 : vector<16x128xf32>
    %cst_24 = arith.constant 9.99999974E-5 : f32
    %40 = vector.broadcast %cst_24 : f32 to vector<16x128xf32>
    %41 = arith.addf %39, %40 : vector<16x128xf32>
    %42 = arith.addf %27, %28 : vector<16x128xf32>
    %cst_25 = arith.constant 8.99999984E-4 : f32
    %43 = vector.broadcast %cst_25 : f32 to vector<16x128xf32>
    %44 = arith.addf %42, %43 : vector<16x128xf32>
    %45 = arith.mulf %41, %44 : vector<16x128xf32>
    %46 = tpu.reciprocal %45 {approx = true} : vector<16x128xf32> -> vector<16x128xf32>
    %47 = arith.mulf %38, %46 : vector<16x128xf32>
    %cst_26 = arith.constant dense<0.000000e+00> : vector<128xf32>
    %48 = vector.multi_reduction <add>, %47, %cst_26 [0] : vector<16x128xf32> to vector<128xf32>
    %49 = vector.shape_cast %48 : vector<128xf32> to vector<1x128xf32>
    %50 = vector.shape_cast %49 : vector<1x128xf32> to vector<1x128xf32>
    %51 = vector.broadcast %50 : vector<1x128xf32> to vector<8x128xf32>
    %c0_27 = arith.constant 0 : index
    %c0_28 = arith.constant 0 : index
    %52 = vector.load %arg5[%c0_27, %c0_28] : memref<8x128xf32, #tpu.memory_space<vmem>>, vector<8x128xf32>
    tpu.vector_store %arg5[%c0_27, %c0_28], %51 {strides = array<i32>} : memref<8x128xf32, #tpu.memory_space<vmem>>, vector<8x128xf32>,
    return
  }
  func.func @transform_0(%arg0: i32) -> (i32, i32) {
    %c0_i32 = arith.constant 0 : i32
    %c0_i32_0 = arith.constant 0 : i32
    return %c0_i32, %arg0 : i32, i32
  }
  func.func @transform_1(%arg0: i32) -> (i32, i32) {
    %c0_i32 = arith.constant 0 : i32
    %c0_i32_0 = arith.constant 0 : i32
    return %c0_i32, %arg0 : i32, i32
  }
  func.func @transform_2(%arg0: i32) -> (i32, i32) {
    %c0_i32 = arith.constant 0 : i32
    %c0_i32_0 = arith.constant 0 : i32
    %c0_i32_1 = arith.constant 0 : i32
    return %c0_i32, %c0_i32_0 : i32, i32
  }
  func.func @transform_3(%arg0: i32) -> (i32, i32) {
    %c0_i32 = arith.constant 0 : i32
    %c0_i32_0 = arith.constant 0 : i32
    %c0_i32_1 = arith.constant 0 : i32
    return %c0_i32, %c0_i32_0 : i32, i32
  }
  func.func @transform_4(%arg0: i32) -> (i32, i32) {
    %c0_i32 = arith.constant 0 : i32
    %c0_i32_0 = arith.constant 0 : i32
    return %arg0, %c0_i32 : i32, i32
  }
}

</mosaic_0001>

<bundles_post_ra>
// kernel: tpu_custom_call.1
= control target key start
LH: loop header
LB: loop body
LE: loop exit
PB: predicated region body
PF: predicated region fallthrough
CT: control target
= control target key end

     0   :  { %9 = vsyncpa [#allocation4], 0  ;;  %s1610_s0 = inlined_call_operand.hbm [shape: f32[16,128], index: 0, kind: input, shape index: {}]   ;;  %s1611_s1 = inlined_call_operand.hbm [shape: f32[16,128], index: 1, kind: input, shape index: {}]   ;;  %s1612_s2 = inlined_call_operand.hbm [shape: f32[128,128], index: 2, kind: input, shape index: {}]   ;;  %s1613_s3 = inlined_call_operand.hbm [shape: f32[16,16], index: 3, kind: input, shape index: {}]   ;;  %s1614_s4 = inlined_call_operand.hbm [shape: f32[8,128], index: 4, kind: output, shape index: {}]  }
   0x1   :  { %10 = vsyncpa [#allocation7], 0 }
   0x2   :  { %11 = vsyncpa [#allocation10], 0 }
   0x3   :  { %12 = vsyncpa [#allocation5], 0  ;;  %s1377_s15 = smov [#allocation6]   ;;  %s1378_s17 = smov [#allocation3]  }
   0x4   :  { %s30_s16 = sshll.u32 %s1377_s15, 4  ;;  %s18_s18 = sshll.u32 %s1378_s17, 4  ;;  %s31_s16 = int_to_ptr.vmem [resolvable:$true] %s30_s16  ;;  %s1410_s18 = int_to_ptr.vmem [resolvable:$true] %s18_s18 }
   0x5   :  { %s1259_s21 = scalar_lea.hbm %s1611_s1, 256 }
   0x6   :  { %p1260_p0 = scmp.ne.s32.totalorder %s1611_s1, %s1259_s21  ;;  %p1263_p1 = scmp.lt.u32.totalorder %s1259_s21, %s1611_s1 }
   0x8   :  { %p1265_p2 = pnand %p1263_p1, %p1260_p0 }
   0xa   :  { %1268 = shalt.err (!%p1265_p2)
}
   0xb   :  { %s1269_s26 = scalar_lea.vmem %s31_s16, 256  ;;  %p1274_p4 = scmp.lt.s32.totalorder %s31_s16, %s31_s16 }
   0xc   :  { %p1270_p3 = scmp.ne.s32.totalorder %s31_s16, %s1269_s26  ;;  %p1275_p5 = scmp.lt.s32.totalorder %s1269_s26, %s1269_s26 }
   0xe   :  { %p1276_p6 = por %p1275_p5, %p1274_p4 }
  0x10   :  { %p1277_p7 = pnand %p1276_p6, %p1270_p3 }
  0x12   :  { %1280 = shalt.err (!%p1277_p7)
}
  0x13   :  { %s1379_s27 = smov 128   ;;  %s1380_s28 = smov 8  }
  0x14   :  { %36 = dma.hbm_to_vmem [thread:$0]  %s1611_s1, 256, %s31_s16, [#allocation7], %s1379_s27, %s1379_s27, %s1380_s28  }
  0x15   :  { %s1281_s7 = scalar_lea.hbm %s1610_s0, 256 }
  0x16   :  { %p1282_p8 = scmp.ne.s32.totalorder %s1610_s0, %s1281_s7  ;;  %p1285_p9 = scmp.lt.u32.totalorder %s1281_s7, %s1610_s0 }
  0x18   :  { %p1287_p10 = pnand %p1285_p9, %p1282_p8 }
  0x1a   :  { %1290 = shalt.err (!%p1287_p10)
}
  0x1b   :  { %s1291_s12 = scalar_lea.vmem %s1410_s18, 256  ;;  %p1296_p12 = scmp.lt.s32.totalorder %s1410_s18, %s1410_s18 }
  0x1c   :  { %p1292_p11 = scmp.ne.s32.totalorder %s1410_s18, %s1291_s12  ;;  %p1297_p13 = scmp.lt.s32.totalorder %s1291_s12, %s1291_s12 }
  0x1e   :  { %p1298_p0 = por %p1297_p13, %p1296_p12 }
  0x20   :  { %p1299_p1 = pnand %p1298_p0, %p1292_p11 }
  0x22   :  { %1302 = shalt.err (!%p1299_p1)
}
  0x23   :  { %24 = dma.hbm_to_vmem [thread:$0]  %s1610_s0, 256, %s1410_s18, [#allocation4], %s1379_s27, %s1379_s27, %s1380_s28  }
  0x24   :  { %s1381_s14 = smov [#allocation8]   ;;  %s1382_s16 = smov [#allocation9]  }
  0x25   :  { %s42_s15 = sshll.u32 %s1381_s14, 4  ;;  %s54_s17 = sshll.u32 %s1382_s16, 4  ;;  %s43_s15 = int_to_ptr.vmem [resolvable:$true] %s42_s15  ;;  %s1447_s17 = int_to_ptr.vmem [resolvable:$true] %s54_s17 }
  0x26   :  { %s1303_s21 = scalar_lea.hbm %s1612_s2, 2048 }
  0x27   :  { %p1304_p2 = scmp.ne.s32.totalorder %s1612_s2, %s1303_s21  ;;  %p1307_p3 = scmp.lt.u32.totalorder %s1303_s21, %s1612_s2 }
  0x29   :  { %p1309_p4 = pnand %p1307_p3, %p1304_p2 }
  0x2b   :  { %1312 = shalt.err (!%p1309_p4)
}
  0x2c   :  { %s1313_s0 = scalar_lea.vmem %s43_s15, 2048  ;;  %p1318_p6 = scmp.lt.s32.totalorder %s43_s15, %s43_s15 }
  0x2d   :  { %p1314_p5 = scmp.ne.s32.totalorder %s43_s15, %s1313_s0  ;;  %p1319_p7 = scmp.lt.s32.totalorder %s1313_s0, %s1313_s0 }
  0x2f   :  { %p1320_p8 = por %p1319_p7, %p1318_p6 }
  0x31   :  { %p1321_p9 = pnand %p1320_p8, %p1314_p5 }
  0x33   :  { %1324 = shalt.err (!%p1321_p9)
}
  0x34   :  { %48 = dma.hbm_to_vmem [thread:$0]  %s1612_s2, 2048, %s43_s15, [#allocation7], %s1379_s27, %s1379_s27, %s1380_s28  }
  0x35   :  { %s1325_s5 = scalar_lea.hbm %s1613_s3, 256 }
  0x36   :  { %p1326_p10 = scmp.ne.s32.totalorder %s1613_s3, %s1325_s5  ;;  %p1329_p11 = scmp.lt.u32.totalorder %s1325_s5, %s1613_s3 }
  0x38   :  { %p1331_p12 = pnand %p1329_p11, %p1326_p10 }
  0x3a   :  { %1334 = shalt.err (!%p1331_p12)
}
  0x3b   :  { %s1335_s10 = scalar_lea.vmem %s1447_s17, 256  ;;  %p1340_p0 = scmp.lt.s32.totalorder %s1447_s17, %s1447_s17 }
  0x3c   :  { %p1336_p13 = scmp.ne.s32.totalorder %s1447_s17, %s1335_s10  ;;  %p1341_p1 = scmp.lt.s32.totalorder %s1335_s10, %s1335_s10 }
  0x3e   :  { %p1342_p2 = por %p1341_p1, %p1340_p0 }
  0x40   :  { %p1343_p3 = pnand %p1342_p2, %p1336_p13 }
  0x42   :  { %1346 = shalt.err (!%p1343_p3)
}
  0x43   :  { %60 = dma.hbm_to_vmem [thread:$0]  %s1613_s3, 256, %s1447_s17, [#allocation10], %s1379_s27, %s1379_s27, %s1380_s28  }
  0x44   :  { %1369 = dma.done.wait [#allocation4], 256  }
  0x45   :  { %1370 = vsyncadd [#allocation4], 4294967040 }
  0x46   :  { %1371 = dma.done.wait [#allocation7], 2304  }
  0x47   :  { %1372 = vsyncadd [#allocation7], 4294964992 }
  0x48   :  { %1373 = dma.done.wait [#allocation10], 256  }
  0x49   :  { %1374 = vsyncadd [#allocation10], 4294967040  ;;  %v77_v0 = vld [vmem:[#allocation8] sm:$0xff]  ;;  %v78_v1 = vld [vmem:[#allocation8 + $0x8] sm:$0xff]  ;;  %v1383_v34 = vmov 0.0   ;;  %vm496_vm0 = vcmask 130048  }
  0x4a   :  { %v79_v2 = vld [vmem:[#allocation8 + $0x10] sm:$0xff]  ;;  %v1484_v3 = vpack.c.bf16 %v78_v1, %v77_v0  ;;  %v80_v4 = vld [vmem:[#allocation8 + $0x18] sm:$0xff]  ;;  %v81_v6 = vld [vmem:[#allocation8 + $0x20] sm:$0xff]  ;;  %s1384_s3 = smov [#allocation11]  }
  0x4b   :  { %v1486_v5 = vpack.c.bf16 %v80_v4, %v79_v2  ;;  %v82_v7 = vld [vmem:[#allocation8 + $0x28] sm:$0xff]  ;;  %v1496_v9 = vld [vmem:[#allocation3] sm:$0xff]  ;;  %v1498_v10 = vld [vmem:[#allocation6] sm:$0xff]  ;;  %s782_s27 = sshll.u32 %s1384_s3, 4  ;;  %s783_s27 = int_to_ptr.vmem [resolvable:$true] %s782_s27 }
  0x4c   :  { %1076 = vmatprep.subr.bf16.mxu0 %v1484_v3  ;;  %1108 = vmatprep.subr.bf16.mxu1 %v1484_v3  ;;  %v1494_v8 = vpack.c.bf16 %v82_v7, %v81_v6  ;;  %v83_v11 = vld [vmem:[#allocation8 + $0x30] sm:$0xff]  ;;  %v84_v12 = vld [vmem:[#allocation8 + $0x38] sm:$0xff]  ;;  %v85_v14 = vld [vmem:[#allocation8 + $0x40] sm:$0xff]  ;;  %v249_v28 = vmul.f32 %v1496_v9, %v1496_v9  ;;  %v328_v29 = vmul.f32 %v1498_v10, %v1498_v10  ;;  %s1347_s28 = scalar_lea.vmem %s783_s27, 128  ;;  %p1352_p5 = scmp.lt.s32.totalorder %s783_s27, %s783_s27 }
  0x4d   :  { %1078 = vmatpush3.bf16.msra.mxu0 %v1484_v3  ;;  %1110 = vmatpush3.bf16.msra.mxu1 %v1484_v3  ;;  %v1506_v13 = vpack.c.bf16 %v84_v12, %v83_v11  ;;  %v86_v15 = vld [vmem:[#allocation8 + $0x48] sm:$0xff]  ;;  %v87_v17 = vld [vmem:[#allocation8 + $0x50] sm:$0xff]  ;;  %v88_v18 = vld [vmem:[#allocation8 + $0x58] sm:$0xff]  ;;  %v407_v32 = vmul.f32 %v1498_v10, %v1496_v9  ;;  %p1348_p4 = scmp.ne.s32.totalorder %s783_s27, %s1347_s28  ;;  %p1353_p6 = scmp.lt.s32.totalorder %s1347_s28, %s1347_s28 }
  0x4e   :  { %1080 = vmatprep.subr.bf16.mxu0 %v1486_v5  ;;  %1112 = vmatprep.subr.bf16.mxu1 %v1486_v5  ;;  %v1512_v16 = vpack.c.bf16 %v86_v15, %v85_v14  ;;  %v1518_v19 = vpack.c.bf16 %v88_v18, %v87_v17  ;;  %v89_v20 = vld [vmem:[#allocation8 + $0x60] sm:$0xff]  ;;  %v90_v21 = vld [vmem:[#allocation8 + $0x68] sm:$0xff]  ;;  %v91_v23 = vld [vmem:[#allocation8 + $0x70] sm:$0xff] }
  0x4f   :  { %925 = vmatprep.mubr.f32.mxu0 %v1496_v9  ;;  %960 = vmatprep.mubr.f32.mxu1 %v1498_v10  ;;  %v1524_v22 = vpack.c.bf16 %v90_v21, %v89_v20  ;;  %v92_v24 = vld [vmem:[#allocation8 + $0x78] sm:$0xff]  ;;  %v74_v26 = vld [vmem:[#allocation3 + $0x8] sm:$0xff]  ;;  %v93_v41 = vld [vmem:[#allocation9] sm:$0xff]  ;;  %p1354_p7 = por %p1353_p6, %p1352_p5 }
  0x50   :  { %v1530_v25 = vpack.c.bf16 %v92_v24, %v91_v23  ;;  %v76_v27 = vld [vmem:[#allocation6 + $0x8] sm:$0xff]  ;;  %v250_v30 = vmul.f32 %v74_v26, %v74_v26  ;;  %v94_v42 = vld [vmem:[#allocation9 + $0x8] sm:$0xff] }
  0x51   :  { %1082 = vmatpush3.bf16.msra.mxu0 %v1486_v5  ;;  %1114 = vmatpush3.bf16.msra.mxu1 %v1486_v5  ;;  %v329_v31 = vmul.f32 %v76_v27, %v76_v27  ;;  %v408_v33 = vmul.f32 %v76_v27, %v74_v26  ;;  %p1355_p8 = pnand %p1354_p7, %p1348_p4 }
  0x52   :  { %1084 = vmatprep.subr.bf16.mxu0 %v1494_v8  ;;  %1116 = vmatprep.subr.bf16.mxu1 %v1494_v8 }
  0x55   :  { %1086 = vmatpush3.bf16.msra.mxu0 %v1494_v8  ;;  %1118 = vmatpush3.bf16.msra.mxu1 %v1494_v8 }
  0x56   :  { %1088 = vmatprep.subr.bf16.mxu0 %v1506_v13  ;;  %1120 = vmatprep.subr.bf16.mxu1 %v1506_v13 }
  0x59   :  { %1090 = vmatpush3.bf16.msra.mxu0 %v1506_v13  ;;  %1122 = vmatpush3.bf16.msra.mxu1 %v1506_v13 }
  0x5a   :  { %1092 = vmatprep.subr.bf16.mxu0 %v1512_v16  ;;  %1124 = vmatprep.subr.bf16.mxu1 %v1512_v16 }
  0x5d   :  { %1094 = vmatpush3.bf16.msra.mxu0 %v1512_v16  ;;  %1126 = vmatpush3.bf16.msra.mxu1 %v1512_v16 }
  0x5e   :  { %1096 = vmatprep.subr.bf16.mxu0 %v1518_v19  ;;  %1128 = vmatprep.subr.bf16.mxu1 %v1518_v19 }
  0x61   :  { %1098 = vmatpush3.bf16.msra.mxu0 %v1518_v19  ;;  %1130 = vmatpush3.bf16.msra.mxu1 %v1518_v19 }
  0x62   :  { %1100 = vmatprep.subr.bf16.mxu0 %v1524_v22  ;;  %1132 = vmatprep.subr.bf16.mxu1 %v1524_v22 }
  0x65   :  { %1102 = vmatpush3.bf16.msra.mxu0 %v1524_v22  ;;  %1134 = vmatpush3.bf16.msra.mxu1 %v1524_v22 }
  0x66   :  { %1104 = vmatprep.subr.bf16.mxu0 %v1530_v25  ;;  %1136 = vmatprep.subr.bf16.mxu1 %v1530_v25 }
  0x69   :  { %1106 = vmatpush3.bf16.msra.mxu0 %v1530_v25  ;;  %1138 = vmatpush3.bf16.msra.mxu1 %v1530_v25 }
  0x6a   :  { %1140 = vmatprep.subr.bf16.mxu0 %v1484_v3  ;;  %1172 = vmatprep.subr.bf16.mxu1 %v1484_v3 }
  0x6c   :  { %926 = vmatmul.mubr.f32.vlgmr.msra.gmra.mrb[0].mxu0 %v74_v26  ;;  %961 = vmatmul.mubr.f32.vlgmr.msra.gmra.mrb[0].mxu1 %v76_v27 }
  0x6d   :  { %1142 = vmatpush3.bf16.msra.mxu0 %v1484_v3  ;;  %1174 = vmatpush3.bf16.msra.mxu1 %v1484_v3 }
  0x6e   :  { %1144 = vmatprep.subr.bf16.mxu0 %v1486_v5  ;;  %1176 = vmatprep.subr.bf16.mxu1 %v1486_v5 }
  0x6f   :  { %995 = vmatprep.mubr.f32.mxu0 %v249_v28  ;;  %1030 = vmatprep.mubr.f32.mxu1 %v328_v29 }
  0x71   :  { %1146 = vmatpush3.bf16.msra.mxu0 %v1486_v5  ;;  %1178 = vmatpush3.bf16.msra.mxu1 %v1486_v5 }
  0x72   :  { %1148 = vmatprep.subr.bf16.mxu0 %v1494_v8  ;;  %1180 = vmatprep.subr.bf16.mxu1 %v1494_v8 }
  0x75   :  { %1150 = vmatpush3.bf16.msra.mxu0 %v1494_v8  ;;  %1182 = vmatpush3.bf16.msra.mxu1 %v1494_v8 }
  0x76   :  { %1152 = vmatprep.subr.bf16.mxu0 %v1506_v13  ;;  %1184 = vmatprep.subr.bf16.mxu1 %v1506_v13 }
  0x79   :  { %1154 = vmatpush3.bf16.msra.mxu0 %v1506_v13  ;;  %1186 = vmatpush3.bf16.msra.mxu1 %v1506_v13 }
  0x7a   :  { %1156 = vmatprep.subr.bf16.mxu0 %v1512_v16  ;;  %1188 = vmatprep.subr.bf16.mxu1 %v1512_v16 }
  0x7d   :  { %1158 = vmatpush3.bf16.msra.mxu0 %v1512_v16  ;;  %1190 = vmatpush3.bf16.msra.mxu1 %v1512_v16 }
  0x7e   :  { %1160 = vmatprep.subr.bf16.mxu0 %v1518_v19  ;;  %1192 = vmatprep.subr.bf16.mxu1 %v1518_v19 }
  0x81   :  { %1162 = vmatpush3.bf16.msra.mxu0 %v1518_v19  ;;  %1194 = vmatpush3.bf16.msra.mxu1 %v1518_v19 }
  0x82   :  { %1164 = vmatprep.subr.bf16.mxu0 %v1524_v22  ;;  %1196 = vmatprep.subr.bf16.mxu1 %v1524_v22 }
  0x85   :  { %1166 = vmatpush3.bf16.msra.mxu0 %v1524_v22  ;;  %1198 = vmatpush3.bf16.msra.mxu1 %v1524_v22 }
  0x86   :  { %1168 = vmatprep.subr.bf16.mxu0 %v1530_v25  ;;  %1200 = vmatprep.subr.bf16.mxu1 %v1530_v25 }
  0x89   :  { %1170 = vmatpush3.bf16.msra.mxu0 %v1530_v25  ;;  %1202 = vmatpush3.bf16.msra.mxu1 %v1530_v25 }
  0x8a   :  { %1204 = vmatprep.subr.bf16.mxu0 %v1484_v3 }
  0x8c   :  { %996 = vmatmul.mubr.f32.vlgmr.msra.gmra.mrb[2].mxu0 %v250_v30  ;;  %1031 = vmatmul.mubr.f32.vlgmr.msra.gmra.mrb[2].mxu1 %v329_v31 }
  0x8d   :  { %1206 = vmatpush3.bf16.msra.mxu0 %v1484_v3  ;;  %1065 = vmatprep.mubr.f32.mxu0 %v407_v32 }
  0x8e   :  { %1208 = vmatprep.subr.bf16.mxu0 %v1486_v5  ;;  %567 = vmatprep.mubr.f32.mxu1 %v1383_v34 }
  0x91   :  { %1210 = vmatpush3.bf16.msra.mxu0 %v1486_v5 }
  0x92   :  { %1212 = vmatprep.subr.bf16.mxu0 %v1494_v8 }
  0x95   :  { %1214 = vmatpush3.bf16.msra.mxu0 %v1494_v8 }
  0x96   :  { %1216 = vmatprep.subr.bf16.mxu0 %v1506_v13 }
  0x99   :  { %1218 = vmatpush3.bf16.msra.mxu0 %v1506_v13 }
  0x9a   :  { %1220 = vmatprep.subr.bf16.mxu0 %v1512_v16 }
  0x9d   :  { %1222 = vmatpush3.bf16.msra.mxu0 %v1512_v16 }
  0x9e   :  { %1224 = vmatprep.subr.bf16.mxu0 %v1518_v19 }
  0xa1   :  { %1226 = vmatpush3.bf16.msra.mxu0 %v1518_v19 }
  0xa2   :  { %1228 = vmatprep.subr.bf16.mxu0 %v1524_v22 }
  0xa5   :  { %1230 = vmatpush3.bf16.msra.mxu0 %v1524_v22 }
  0xa6   :  { %1232 = vmatprep.subr.bf16.mxu0 %v1530_v25 }
  0xa9   :  { %1234 = vmatpush3.bf16.msra.mxu0 %v1530_v25 }
  0xac   :  { %1066 = vmatmul.mubr.f32.vlgmr.msra.gmra.mrb[4].mxu0 %v408_v33 }
 0x13f   :  { %v927_v35 = vpop.f32.mrb[0].mxu0  ;;  %v962_v36 = vpop.f32.mrb[0].mxu1 }
 0x140   :  { %v161_v37 = vpop.f32.mrb[1].mxu0  ;;  %v238_v38 = vpop.f32.mrb[1].mxu1 }
 0x141   :  { %v1237_v39 = vpack.c.bf16 %v927_v35, %v161_v37  ;;  %v1235_v40 = vpack.c.bf16 %v962_v36, %v238_v38 }
 0x143   :  { %1236 = vmatprep.subr.bf16.mxu1 %v1235_v40 }
 0x144   :  { %1238 = vmatpush1.bf16.msra.mxu1 %v1237_v39 }
 0x147   :  { %793 = vmatmul.mubr.msk.f32.vlgmr.msra.gmra.mrb[4].mxu1 %vm496_vm0, %v93_v41 }
 0x148   :  { %573 = vmatprep.mubr.f32.mxu1 %v1383_v34 }
 0x14b   :  { %794 = vmatmul.mubr.msk.f32.gmra.mrb[6].mxu1 %vm496_vm0, %v94_v42 }
 0x14c   :  { %644 = vmatprep.mubr.f32.mxu1 %v1383_v34 }
 0x15f   :  { %v997_v43 = vpop.f32.mrb[2].mxu0  ;;  %v1032_v44 = vpop.f32.mrb[2].mxu1 }
 0x160   :  { %v317_v45 = vpop.f32.mrb[3].mxu0  ;;  %v396_v46 = vpop.f32.mrb[3].mxu1 }
 0x161   :  { %v1241_v47 = vpack.c.bf16 %v997_v43, %v317_v45  ;;  %v1239_v48 = vpack.c.bf16 %v1032_v44, %v396_v46 }
 0x163   :  { %1240 = vmatprep.subr.bf16.mxu1 %v1239_v48 }
 0x164   :  { %1242 = vmatpush1.bf16.msra.mxu1 %v1241_v47 }
 0x167   :  { %795 = vmatmul.mubr.msk.f32.vlgmr.msra.gmra.mrb[8].mxu1 %vm496_vm0, %v93_v41 }
 0x168   :  { %650 = vmatprep.mubr.f32.mxu1 %v1383_v34 }
 0x16b   :  { %796 = vmatmul.mubr.msk.f32.gmra.mrb[10].mxu1 %vm496_vm0, %v94_v42 }
 0x16c   :  { %1072 = vmatprep.mubr.msk.f32.mxu1 %vm496_vm0, %v93_v41 }
 0x17f   :  { %v1067_v49 = vpop.f32.mrb[4].mxu0 }
 0x180   :  { %v475_v50 = vpop.f32.mrb[5].mxu0 }
 0x181   :  { %v1243_v51 = vpack.c.bf16 %v1067_v49, %v475_v50 }
 0x183   :  { %1244 = vmatprep.subr.bf16.mxu1 %v1243_v51 }
 0x184   :  { %1246 = vmatpush3.bf16.msra.mxu1 %v1243_v51 }
 0x187   :  { %1073 = vmatmul.mubr.msk.f32.vlgmr.msra.gmra.mrb[12].mxu1 %vm496_vm0, %v94_v42 }
 0x21a   :  { %v569_v52 = vpop.f32.mrb[4].mxu1 }
 0x21b   :  { %v571_v53 = vpop.f32.mrb[5].mxu1  ;;  %v732_v54 = vmul.f32 %v569_v52, %v569_v52 }
 0x21c   :  { %v734_v55 = vmul.f32 %v571_v53, %v571_v53  ;;  %v736_v56 = vmul.f32 %v571_v53, %v569_v52 }
 0x21e   :  { %v754_v57 = vadd.f32 %v734_v55, %v732_v54  ;;  %v575_v58 = vpop.f32.mrb[6].mxu1  ;;  %v744_v20 = vmul.f32 2.0, %v736_v56 }
 0x21f   :  { %v577_v59 = vpop.f32.mrb[7].mxu1  ;;  %v733_v60 = vmul.f32 %v575_v58, %v575_v58 }
 0x220   :  { %v735_v61 = vmul.f32 %v577_v59, %v577_v59  ;;  %v737_v62 = vmul.f32 %v577_v59, %v575_v58  ;;  %v756_v4 = vadd.f32 0.0001, %v754_v57  ;;  %v746_v26 = vadd.f32 0.0001, %v744_v20 }
 0x222   :  { %v755_v63 = vadd.f32 %v735_v61, %v733_v60  ;;  %v745_v17 = vmul.f32 2.0, %v737_v62 }
 0x224   :  { %v757_v11 = vadd.f32 0.0001, %v755_v63  ;;  %v747_v24 = vadd.f32 0.0001, %v745_v17 }
 0x23a   :  { %v646_v0 = vpop.f32.mrb[8].mxu1 }
 0x23b   :  { %v738_v1 = vsub.f32 %v646_v0, %v732_v54  ;;  %v648_v2 = vpop.f32.mrb[9].mxu1 }
 0x23c   :  { %v740_v3 = vsub.f32 %v648_v2, %v734_v55 }
 0x23e   :  { %v758_v5 = vadd.f32 %v740_v3, %v738_v1  ;;  %v652_v6 = vpop.f32.mrb[10].mxu1 }
 0x23f   :  { %v739_v7 = vsub.f32 %v652_v6, %v733_v60  ;;  %v654_v8 = vpop.f32.mrb[11].mxu1 }
 0x240   :  { %v760_v9 = vadd.f32 0.0009, %v758_v5  ;;  %v741_v10 = vsub.f32 %v654_v8, %v735_v61 }
 0x242   :  { %v762_v12 = vmul.f32 %v760_v9, %v756_v4  ;;  %v759_v13 = vadd.f32 %v741_v10, %v739_v7 }
 0x244   :  { %v761_v14 = vadd.f32 0.0009, %v759_v13 }
 0x246   :  { %v763_v15 = vmul.f32 %v761_v14, %v757_v11 }
 0x248   :  { %1255 = vrcp.f32 %v763_v15 }
 0x249   :  { %1257 = vrcp.f32 %v762_v12 }
 0x252   :  { %v1256_v29 = vpop.eup %1255 }
 0x253   :  { %v1258_v31 = vpop.eup %1257 }
 0x25a   :  { %v1074_v16 = vpop.f32.mrb[12].mxu1 }
 0x25b   :  { %v743_v18 = vsub.f32 %v1074_v16, %v737_v62  ;;  %v723_v19 = vpop.f32.mrb[13].mxu1 }
 0x25c   :  { %v742_v21 = vsub.f32 %v723_v19, %v736_v56 }
 0x25d   :  { %v749_v22 = vmul.f32 2.0, %v743_v18 }
 0x25e   :  { %v748_v23 = vmul.f32 2.0, %v742_v21 }
 0x25f   :  { %v751_v25 = vadd.f32 0.0009, %v749_v22 }
 0x260   :  { %v750_v27 = vadd.f32 0.0009, %v748_v23 }
 0x261   :  { %v753_v28 = vmul.f32 %v751_v25, %v747_v24 }
 0x262   :  { %v752_v30 = vmul.f32 %v750_v27, %v746_v26 }
 0x263   :  { %v767_v32 = vmul.f32 %v1256_v29, %v753_v28 }
 0x264   :  { %v766_v33 = vmul.f32 %v1258_v31, %v752_v30 }
 0x266   :  { %v768_v34 = vadd.f32 %v767_v32, %v766_v33 }
 0x268   :  { %v769_v35 = vrot.slane %v768_v34, 4 }
 0x26a   :  { %v770_v36 = vadd.f32 %v769_v35, %v768_v34 }
 0x26c   :  { %v771_v37 = vrot.slane %v770_v36, 2 }
 0x26e   :  { %v772_v38 = vadd.f32 %v771_v37, %v770_v36 }
 0x270   :  { %v773_v39 = vrot.slane %v772_v38, 1 }
 0x272   :  { %v774_v40 = vadd.f32 %v773_v39, %v772_v38 }
 0x274   :  { %775 = vst [vmem:[#allocation11] sm:$0xff] %v774_v40 }
 0x275   :  { %1358 = shalt.err (!%p1355_p8)
}
 0x276   :  { %s1359_s13 = scalar_lea.hbm %s1614_s4, 128 }
 0x277   :  { %p1360_p9 = scmp.ne.s32.totalorder %s1614_s4, %s1359_s13  ;;  %p1363_p10 = scmp.lt.u32.totalorder %s1359_s13, %s1614_s4 }
 0x279   :  { %p1365_p11 = pnand %p1363_p10, %p1360_p9 }
 0x27b   :  { %1368 = shalt.err (!%p1365_p11)
}
 0x27c   :  { %785 = dma.vmem_to_hbm [thread:$0]  %s783_s27, 128, %s1614_s4, [#allocation5]  }
 0x27d   :  { %1375 = dma.done.wait [#allocation5], 128  }
 0x27e   :  { %1376 = vsyncadd [#allocation5], 4294967168 }
 0x27f   :  { %789 = vsyncpa [#allocation4], 1 }
 0x280   :  { %790 = vsyncpa [#allocation7], 1 }
 0x281   :  { %791 = vsyncpa [#allocation10], 1 }
 0x282   :  { %792 = vsyncpa [#allocation5], 1 }

</bundles_post_ra>
